<compile_context>
chip_gen: v5e
topology: v5e:2x2
jax: 0.10.0
libtpu: 0.0.40
codegen_flags: <defaults>
</compile_context>

<pallas_src>
import functools

import jax
import jax.numpy as jnp
from jax.experimental import pallas as pl
from jax.experimental.pallas import tpu as pltpu


def _round_up(n, m):
    return (n + m - 1) // m * m


def _choose_tm(B, tm, min_steps=2):
    """Batch tile: multiple of 8 (or == B), <= tm, and split into >= min_steps
    grid steps when B is large enough (so v7x's 2 TensorCores both get work)."""
    if B <= 8:
        return B  # single tiny block; block dim == full array dim is legal
    steps = max(min_steps, pl.cdiv(B, tm))
    TM = _round_up(pl.cdiv(B, steps), 8)
    return max(8, min(TM, _round_up(B, 8)))


def mlp_kernel(x_ref, w1_ref, b1_ref, w2_ref, b2_ref, w3_ref, b3_ref, o_ref):
    # One fused, fully VMEM-resident step: 3 MXU matmuls + bias + ReLU.
    cdt = w1_ref.dtype                    # MXU operand dtype (bf16 or f32)
    x = x_ref[...].astype(cdt)
    h1 = jnp.dot(x, w1_ref[...], preferred_element_type=jnp.float32) + b1_ref[...]
    h1 = jnp.maximum(h1, 0.0)
    h2 = jnp.dot(h1.astype(cdt), w2_ref[...], preferred_element_type=jnp.float32) + b2_ref[...]
    h2 = jnp.maximum(h2, 0.0)
    h3 = jnp.dot(h2.astype(cdt), w3_ref[...], preferred_element_type=jnp.float32) + b3_ref[...]
    o_ref[...] = h3.astype(o_ref.dtype)


@functools.partial(jax.jit, static_argnames=("tm", "use_bf16"))
def solve_forward(x, params, tm=2048, use_bf16=True):
    """x: (B, i) float32. params: (in,out) weights, (1,out) biases."""
    w1, b1 = params["w1"], params["b1"]
    w2, b2 = params["w2"], params["b2"]
    w3, b3 = params["w3"], params["b3"]

    B, i = x.shape
    H1 = w1.shape[1]          # 128
    H2 = w2.shape[1]          # 16
    o = w3.shape[1]

    # Weight cast is tiny (<100 KiB) and hoisted out of the per-tile hot path
    # under jit; biases stay f32 (added to the f32 MXU accumulator).
    wdt = jnp.bfloat16 if use_bf16 else jnp.float32
    w1c, w2c, w3c = w1.astype(wdt), w2.astype(wdt), w3.astype(wdt)
    b1c, b2c, b3c = (b.astype(jnp.float32) for b in (b1, b2, b3))

    TM = _choose_tm(B, tm)
    grid = (pl.cdiv(B, TM),)   # boundary handled by Pallas; no physical B padding

    wbytes = ((w1c.size + w2c.size + w3c.size) * w1c.dtype.itemsize
              + 4 * (b1c.size + b2c.size + b3c.size))
    cost = pl.CostEstimate(
        flops=2 * B * (i * H1 + H1 * H2 + H2 * o),
        transcendentals=0,
        bytes_accessed=x.size * x.dtype.itemsize + 4 * B * o + wbytes,
    )

    out = pl.pallas_call(
        mlp_kernel,
        out_shape=jax.ShapeDtypeStruct((B, o), jnp.float32),
        grid=grid,
        in_specs=[
            pl.BlockSpec((TM, i), lambda b: (b, 0)),    # x: batch-tiled, unpadded
            pl.BlockSpec((i, H1), lambda b: (0, 0)),    # w1: VMEM-resident
            pl.BlockSpec((1, H1), lambda b: (0, 0)),    # b1
            pl.BlockSpec((H1, H2), lambda b: (0, 0)),   # w2
            pl.BlockSpec((1, H2), lambda b: (0, 0)),    # b2
            pl.BlockSpec((H2, o), lambda b: (0, 0)),    # w3
            pl.BlockSpec((1, o), lambda b: (0, 0)),     # b3
        ],
        out_specs=pl.BlockSpec((TM, o), lambda b: (b, 0)),
        compiler_params=pltpu.CompilerParams(
            dimension_semantics=("parallel",),
        ),
        cost_estimate=cost,
    )(x, w1c, b1c, w2c, b2c, w3c, b3c)
    return out


def init_params(key, i, o):
    """Deterministic init mimicking nn.Linear default (U[-1/sqrt(fan_in), +])."""
    ks = jax.random.split(key, 6)

    def lin(kw, kb, fan_in, fan_out):
        bound = 1.0 / jnp.sqrt(jnp.float32(fan_in))
        w = jax.random.uniform(kw, (fan_in, fan_out), jnp.float32, -bound, bound)
        b = jax.random.uniform(kb, (1, fan_out), jnp.float32, -bound, bound)
        return w, b

    w1, b1 = lin(ks[0], ks[1], i, 128)
    w2, b2 = lin(ks[2], ks[3], 128, 16)
    w3, b3 = lin(ks[4], ks[5], 16, o)
    return {"w1": w1, "b1": b1, "w2": w2, "b2": b2, "w3": w3, "b3": b3}


def reference_forward(x, p):
    h1 = jnp.maximum(x @ p["w1"] + p["b1"], 0.0)
    h2 = jnp.maximum(h1 @ p["w2"] + p["b2"], 0.0)
    return h2 @ p["w3"] + p["b3"]


if __name__ == "__main__":
    key = jax.random.PRNGKey(0)
    k_x, k_p, k_x2 = jax.random.split(key, 3)

    B, i, o = 8, 32, 8  # small shapes consistent with the module's forward
    x = jax.random.normal(k_x, (B, i), jnp.float32)
    params = init_params(k_p, i, o)

    # Default (bf16 MXU operands, f32 accumulation) — relaxed tolerance.
    out = jax.block_until_ready(solve_forward(x, params))
    ref = reference_forward(x, params)
    assert out.shape == (B, o)
    assert jnp.allclose(out, ref, atol=3e-2, rtol=3e-2), "bf16 path mismatch"

    # Multi-step grid + non-divisible batch (exercises pl.cdiv boundary path
    # and the >=2-step tiling used to feed both v7x TensorCores).
    B2 = 300
    x2 = jax.random.normal(k_x2, (B2, i), jnp.float32)
    out2 = jax.block_until_ready(solve_forward(x2, params))
    ref2 = reference_forward(x2, params)
    assert out2.shape == (B2, o)
    assert jnp.allclose(out2, ref2, atol=3e-2, rtol=3e-2), "boundary path mismatch"

    # Exact f32 path for tight parity with the reference math.
    out3 = jax.block_until_ready(solve_forward(x, params, use_bf16=False))
    assert jnp.allclose(out3, ref, atol=1e-5, rtol=1e-5), "f32 path mismatch"

    print("KERNEL_OK")
</pallas_src>

<mosaic_0001>
module attributes {stable_mosaic.version = 11 : i64} {
  func.func @mlp_kernel(%arg0: i32, %arg1: memref<8x32xf32, #tpu.memory_space<vmem>>, %arg2: memref<32x128xbf16, #tpu.memory_space<vmem>>, %arg3: memref<1x128xf32, #tpu.memory_space<vmem>>, %arg4: memref<128x16xbf16, #tpu.memory_space<vmem>>, %arg5: memref<1x16xf32, #tpu.memory_space<vmem>>, %arg6: memref<16x8xbf16, #tpu.memory_space<vmem>>, %arg7: memref<1x8xf32, #tpu.memory_space<vmem>>, %arg8: memref<8x8xf32, #tpu.memory_space<vmem>>) attributes {dimension_semantics = [#tpu.dimension_semantics<parallel>], iteration_bounds = array<i64: 1>, scalar_prefetch = 0 : i64, scratch_operands = 0 : i64, tpu.core_type = #tpu.core_type<tc>, window_params = [{transform_indices = @transform_0, window_bounds = array<i64: 8, 32>}, {pipeline_mode = #tpu.pipeline_mode<synchronous>, transform_indices = @transform_1, window_bounds = array<i64: 32, 128>}, {pipeline_mode = #tpu.pipeline_mode<synchronous>, transform_indices = @transform_2, window_bounds = array<i64: 1, 128>}, {pipeline_mode = #tpu.pipeline_mode<synchronous>, transform_indices = @transform_3, window_bounds = array<i64: 128, 16>}, {pipeline_mode = #tpu.pipeline_mode<synchronous>, transform_indices = @transform_4, window_bounds = array<i64: 1, 16>}, {pipeline_mode = #tpu.pipeline_mode<synchronous>, transform_indices = @transform_5, window_bounds = array<i64: 16, 8>}, {pipeline_mode = #tpu.pipeline_mode<synchronous>, transform_indices = @transform_6, window_bounds = array<i64: 1, 8>}, {transform_indices = @transform_7, window_bounds = array<i64: 8, 8>}]} {
    %c0 = arith.constant 0 : index
    %c0_0 = arith.constant 0 : index
    %0 = vector.load %arg1[%c0, %c0_0] : memref<8x32xf32, #tpu.memory_space<vmem>>, vector<8x32xf32>
    %1 = arith.truncf %0 : vector<8x32xf32> to vector<8x32xbf16>
    %c0_1 = arith.constant 0 : index
    %c0_2 = arith.constant 0 : index
    %2 = vector.load %arg2[%c0_1, %c0_2] : memref<32x128xbf16, #tpu.memory_space<vmem>>, vector<32x128xbf16>
    %cst = arith.constant dense<0.000000e+00> : vector<8x128xf32>
    %3 = tpu.matmul %1, %2, %cst {dimension_numbers = #tpu.dot_dimension_numbers<[1], [0], [0], [1], [0, 0, 1, 1], [], []>} : vector<8x32xbf16>, vector<32x128xbf16>, vector<8x128xf32> -> vector<8x128xf32>
    %c0_3 = arith.constant 0 : index
    %c0_4 = arith.constant 0 : index
    %4 = vector.load %arg3[%c0_3, %c0_4] : memref<1x128xf32, #tpu.memory_space<vmem>>, vector<1x128xf32>
    %5 = vector.broadcast %4 : vector<1x128xf32> to vector<8x128xf32>
    %6 = arith.addf %3, %5 : vector<8x128xf32>
    %cst_5 = arith.constant 0.000000e+00 : f32
    %7 = vector.broadcast %cst_5 : f32 to vector<8x128xf32>
    %8 = arith.maximumf %6, %7 : vector<8x128xf32>
    %9 = arith.truncf %8 : vector<8x128xf32> to vector<8x128xbf16>
    %c0_6 = arith.constant 0 : index
    %c0_7 = arith.constant 0 : index
    %10 = vector.load %arg4[%c0_6, %c0_7] : memref<128x16xbf16, #tpu.memory_space<vmem>>, vector<128x16xbf16>
    %cst_8 = arith.constant dense<0.000000e+00> : vector<8x16xf32>
    %11 = tpu.matmul %9, %10, %cst_8 {dimension_numbers = #tpu.dot_dimension_numbers<[1], [0], [0], [1], [0, 0, 1, 1], [], []>} : vector<8x128xbf16>, vector<128x16xbf16>, vector<8x16xf32> -> vector<8x16xf32>
    %c0_9 = arith.constant 0 : index
    %c0_10 = arith.constant 0 : index
    %12 = vector.load %arg5[%c0_9, %c0_10] : memref<1x16xf32, #tpu.memory_space<vmem>>, vector<1x16xf32>
    %13 = vector.broadcast %12 : vector<1x16xf32> to vector<8x16xf32>
    %14 = arith.addf %11, %13 : vector<8x16xf32>
    %cst_11 = arith.constant 0.000000e+00 : f32
    %15 = vector.broadcast %cst_11 : f32 to vector<8x16xf32>
    %16 = arith.maximumf %14, %15 : vector<8x16xf32>
    %17 = arith.truncf %16 : vector<8x16xf32> to vector<8x16xbf16>
    %c0_12 = arith.constant 0 : index
    %c0_13 = arith.constant 0 : index
    %18 = vector.load %arg6[%c0_12, %c0_13] : memref<16x8xbf16, #tpu.memory_space<vmem>>, vector<16x8xbf16>
    %cst_14 = arith.constant dense<0.000000e+00> : vector<8x8xf32>
    %19 = tpu.matmul %17, %18, %cst_14 {dimension_numbers = #tpu.dot_dimension_numbers<[1], [0], [0], [1], [0, 0, 1, 1], [], []>} : vector<8x16xbf16>, vector<16x8xbf16>, vector<8x8xf32> -> vector<8x8xf32>
    %c0_15 = arith.constant 0 : index
    %c0_16 = arith.constant 0 : index
    %20 = vector.load %arg7[%c0_15, %c0_16] : memref<1x8xf32, #tpu.memory_space<vmem>>, vector<1x8xf32>
    %21 = vector.broadcast %20 : vector<1x8xf32> to vector<8x8xf32>
    %22 = arith.addf %19, %21 : vector<8x8xf32>
    %c0_17 = arith.constant 0 : index
    %c0_18 = arith.constant 0 : index
    %23 = vector.load %arg8[%c0_17, %c0_18] : memref<8x8xf32, #tpu.memory_space<vmem>>, vector<8x8xf32>
    tpu.vector_store %arg8[%c0_17, %c0_18], %22 {strides = array<i32>} : memref<8x8xf32, #tpu.memory_space<vmem>>, vector<8x8xf32>,
    return
  }
  func.func @transform_0(%arg0: i32) -> (i32, i32) {
    %c0_i32 = arith.constant 0 : i32
    %c0_i32_0 = arith.constant 0 : i32
    return %arg0, %c0_i32 : i32, i32
  }
  func.func @transform_1(%arg0: i32) -> (i32, i32) {
    %c0_i32 = arith.constant 0 : i32
    %c0_i32_0 = arith.constant 0 : i32
    %c0_i32_1 = arith.constant 0 : i32
    return %c0_i32, %c0_i32_0 : i32, i32
  }
  func.func @transform_2(%arg0: i32) -> (i32, i32) {
    %c0_i32 = arith.constant 0 : i32
    %c0_i32_0 = arith.constant 0 : i32
    %c0_i32_1 = arith.constant 0 : i32
    return %c0_i32, %c0_i32_0 : i32, i32
  }
  func.func @transform_3(%arg0: i32) -> (i32, i32) {
    %c0_i32 = arith.constant 0 : i32
    %c0_i32_0 = arith.constant 0 : i32
    %c0_i32_1 = arith.constant 0 : i32
    return %c0_i32, %c0_i32_0 : i32, i32
  }
  func.func @transform_4(%arg0: i32) -> (i32, i32) {
    %c0_i32 = arith.constant 0 : i32
    %c0_i32_0 = arith.constant 0 : i32
    %c0_i32_1 = arith.constant 0 : i32
    return %c0_i32, %c0_i32_0 : i32, i32
  }
  func.func @transform_5(%arg0: i32) -> (i32, i32) {
    %c0_i32 = arith.constant 0 : i32
    %c0_i32_0 = arith.constant 0 : i32
    %c0_i32_1 = arith.constant 0 : i32
    return %c0_i32, %c0_i32_0 : i32, i32
  }
  func.func @transform_6(%arg0: i32) -> (i32, i32) {
    %c0_i32 = arith.constant 0 : i32
    %c0_i32_0 = arith.constant 0 : i32
    %c0_i32_1 = arith.constant 0 : i32
    return %c0_i32, %c0_i32_0 : i32, i32
  }
  func.func @transform_7(%arg0: i32) -> (i32, i32) {
    %c0_i32 = arith.constant 0 : i32
    %c0_i32_0 = arith.constant 0 : i32
    return %arg0, %c0_i32 : i32, i32
  }
}

</mosaic_0001>

<bundles_post_ra>
// kernel: solve_forward.1
= control target key start
LH: loop header
LB: loop body
LE: loop exit
PB: predicated region body
PF: predicated region fallthrough
CT: control target
= control target key end

     0   :  { %s375_s0 = inlined_call_operand.vmem [shape: f32[8,32], index: 0, kind: input, shape index: {}]   ;;  %s376_s1 = inlined_call_operand.vmem [shape: bf16[32,128], index: 1, kind: input, shape index: {}]   ;;  %s377_s2 = inlined_call_operand.vmem [shape: f32[1,128], index: 2, kind: input, shape index: {}]   ;;  %s378_s3 = inlined_call_operand.vmem [shape: bf16[128,16], index: 3, kind: input, shape index: {}]   ;;  %s379_s4 = inlined_call_operand.vmem [shape: f32[1,16], index: 4, kind: input, shape index: {}]   ;;  %s380_s5 = inlined_call_operand.vmem [shape: bf16[16,8], index: 5, kind: input, shape index: {}]   ;;  %s381_s6 = inlined_call_operand.vmem [shape: f32[1,8], index: 6, kind: input, shape index: {}]   ;;  %s382_s7 = inlined_call_operand.hbm [shape: f32[8,8], index: 7, kind: output, shape index: {}]  }
   0x1   :  { %v246_v0 = vld [vmem:[%s376_s1 + $0x8] sm:$0xff]  ;;  %v254_v1 = vld [vmem:[%s378_s3 + $0x38] sm:$0xff]  ;;  %v245_v2 = vld [vmem:[%s376_s1] sm:$0xff] }
   0x2   :  { %60 = vmatpush.bf16.msra.mxu0 %v246_v0  ;;  %v28_v3 = vld [vmem:[%s375_s0] sm:$0xff]  ;;  %137 = vmatpush.bf16.msra.mxu1 %v254_v1  ;;  %v253_v4 = vld [vmem:[%s378_s3 + $0x30] sm:$0xff] }
   0x3   :  { %12 = vsyncpa [#allocation3], 0  ;;  %v29_v5 = vpack.c.bf16 %v28_v3, %v28_v3  ;;  %vm50_vm0 = vcmask 261120   ;;  %v252_v6 = vld [vmem:[%s378_s3 + $0x28] sm:$0xff]  ;;  %v251_v7 = vld [vmem:[%s378_s3 + $0x20] sm:$0xff]  ;;  %vm164_vm1 = vcmask 130048  }
   0x4   :  { %v250_v8 = vld [vmem:[%s378_s3 + $0x18] sm:$0xff]  ;;  %v249_v9 = vld [vmem:[%s378_s3 + $0x10] sm:$0xff]  ;;  %v248_v10 = vld [vmem:[%s378_s3 + $0x8] sm:$0xff]  ;;  %s286_s27 = smov [#allocation2]   ;;  %s190_s30 = sshll.u32 %s382_s7, 4  ;;  %vm181_vm2 = vcmask 64512   ;;  %s191_s30 = int_to_ptr.hbm [resolvable:$true] %s190_s30 }
   0x5   :  { %v247_v11 = vld [vmem:[%s378_s3] sm:$0xff]  ;;  %s188_s28 = sshll.u32 %s286_s27, 4  ;;  %s189_s28 = int_to_ptr.vmem [resolvable:$true] %s188_s28 }
   0x6   :  { %61 = vmatpush.bf16.msra.mxu0 %v245_v2  ;;  %138 = vmatpush.bf16.msra.mxu1 %v253_v4  ;;  %v257_v12 = vld [vmem:[%s377_s2] ss:$0 sm:$0xff] }
   0x7   :  { %v255_v18 = vld [vmem:[%s380_s5] sm:$0xff] }
   0x8   :  { %175 = vmatpush.bf16.msra.mxu2 %v255_v18  ;;  %v258_v19 = vld [vmem:[%s379_s4] ss:$0 sm:$0xff] }
   0x9   :  { %207 = vmatmul.msk.bf16.vlgmr.msra.gmra.mxu0 %vm50_vm0, %v29_v5  ;;  %v259_v25 = vld [vmem:[%s381_s6] ss:$0 sm:$0xff] }
   0xa   :  { %139 = vmatpush.bf16.msra.mxu1 %v252_v6 }
   0xe   :  { %140 = vmatpush.bf16.msra.mxu1 %v251_v7 }
  0x12   :  { %141 = vmatpush.bf16.msra.mxu1 %v250_v8 }
  0x16   :  { %142 = vmatpush.bf16.msra.mxu1 %v249_v9 }
  0x1a   :  { %143 = vmatpush.bf16.msra.mxu1 %v248_v10 }
  0x1e   :  { %144 = vmatpush.bf16.msra.mxu1 %v247_v11 }
  0x86   :  { %v63_v13 = vpop.f32.mrf.mxu0 }
  0x87   :  { %v64_v14 = vadd.f32 %v257_v12, %v63_v13 }
  0x89   :  { %v67_v15 = vmax.f32 %v64_v14, 0.0 }
  0x8b   :  { %v68_v16 = vpack.c.bf16 %v67_v15, %v67_v15 }
  0x8d   :  { %145 = vmatmul.bf16.vlgmr.msra.gmra.mxu1 %v68_v16 }
  0x8e   :  { %v65_v17 = vpop.f32.mrf.mxu0 }
 0x10a   :  { %v146_v20 = vpop.f32.mrf.mxu1 }
 0x10b   :  { %v147_v21 = vadd.f32 %v258_v19, %v146_v20 }
 0x10d   :  { %v150_v22 = vmax.f32 %v147_v21, 0.0 }
 0x10f   :  { %v151_v23 = vpack.c.bf16 %v150_v22, %v150_v22 }
 0x111   :  { %244 = vmatmul.msk.bf16.vlgmr.msra.gmra.mxu2 %vm164_vm1, %v151_v23 }
 0x112   :  { %v148_v24 = vpop.f32.mrf.mxu1 }
 0x194   :  { %v177_v26 = vpop.f32.mrf.mxu2 }
 0x195   :  { %v178_v27 = vadd.f32 %v259_v25, %v177_v26 }
 0x197   :  { %182 = vst.msk [vmem:[#allocation2] sm:$0xff] %vm181_vm2, %v178_v27 }
 0x198   :  { %193 = dma.vmem_to_hbm [thread:$0]  %s189_s28, 128, %s191_s30, [#allocation3]  }
 0x19c   :  { %v179_v28 = vpop.f32.mrf.mxu2 }
 0x19d   :  { %284 = dma.done.wait [#allocation3], 128  }
 0x19e   :  { %285 = vsyncadd [#allocation3], 4294967168 }
 0x19f   :  { %198 = vsyncpa [#allocation3], 1 }

</bundles_post_ra>
